<compile_context>
chip_gen: v7x
topology: tpu7x:2x2x1
jax: 0.10.0
libtpu: 0.0.40
codegen_flags: <defaults>
</compile_context>

<pallas_src>
import numpy as np
import jax
import jax.numpy as jnp
from jax import lax
from jax.experimental import pallas as pl
from jax.experimental.pallas import tpu as pltpu


def _round_up(a, m):
    return ((a + m - 1) // m) * m


# ---------------------------------------------------------------------------
# Kernel
# ---------------------------------------------------------------------------
def gabor_kernel(x_ref, we_ref, wl_ref, o_ref):
    # x_ref:  [TILE_N, D]
    # we_ref: [D+2, TILE_O]   exponent weights (contraction-major)
    # wl_ref: [D+2, TILE_O]   linear   weights (contraction-major)
    # o_ref:  [TILE_N, TILE_O]
    x = x_ref[...].astype(jnp.float32)                       # cast in-kernel (free)
    x2 = jnp.sum(x * x, axis=1, keepdims=True)               # [TILE_N, 1] (XLU, has slack)
    xa = jnp.concatenate([x, x2, jnp.ones_like(x2)], axis=1)  # [TILE_N, D+2]

    dn = (((1,), (0,)), ((), ()))                             # standard (M,K)x(K,N)
    exponent = lax.dot_general(xa, we_ref[...], dn,
                               preferred_element_type=jnp.float32)
    lin = lax.dot_general(xa, wl_ref[...], dn,
                          preferred_element_type=jnp.float32)

    # exp -> EUP slot, sin -> VPU polynomial, one final VPU multiply.
    o_ref[...] = (jnp.exp(exponent) * jnp.sin(lin)).astype(o_ref.dtype)


# ---------------------------------------------------------------------------
# Parameter preparation (done ONCE at layer init, not per call)
# ---------------------------------------------------------------------------
def prepare_gabor_params(mu, gamma, w, b):
    """Fold gamma/bias/constants into two contraction-major augmented weight
    matrices, pad out_dim up to a multiple of 128 (lane-dense output)."""
    O, D = mu.shape
    O_pad = _round_up(O, 128)

    mu = mu.astype(jnp.float32)
    gamma = gamma.astype(jnp.float32)
    w = w.astype(jnp.float32)
    b = b.astype(jnp.float32)

    # exponent = x.(gamma*mu) + ||x||^2 * (-gamma/2) + 1 * (-gamma/2*||mu||^2)
    we = jnp.concatenate(
        [(gamma[:, None] * mu).T,                                  # [D, O]
         (-0.5 * gamma)[None, :],                                  # [1, O]
         (-0.5 * gamma * jnp.sum(mu * mu, axis=1))[None, :]],      # [1, O]
        axis=0)                                                    # [D+2, O]
    # lin = x.W^T + ||x||^2 * 0 + 1 * b
    wl = jnp.concatenate(
        [w.T, jnp.zeros((1, O), jnp.float32), b[None, :]], axis=0)  # [D+2, O]

    pad = ((0, 0), (0, O_pad - O))   # padded output columns -> exp(0)*sin(0)=0
    return dict(we=jnp.pad(we, pad), wl=jnp.pad(wl, pad),
                in_dim=D, out_dim=O, out_pad=O_pad)


# ---------------------------------------------------------------------------
# Wrapper
# ---------------------------------------------------------------------------
def gabor_layer(x, params, *, tile_n=1024, col_tile=2048,
                out_dtype=jnp.float32, trim_output=True,
                vmem_limit_bytes=48 * 1024 * 1024):
    """x: [N, in_dim]; params from prepare_gabor_params.

    Returns [N, out_dim] (or [N, out_pad] if trim_output=False — preferred at
    the model level when out_dim is already a multiple of 128, since it avoids
    an extra HBM pass over the output)."""
    N, D = x.shape
    assert D == params["in_dim"]
    O, O_pad = params["out_dim"], params["out_pad"]
    Da = D + 2

    # Output-column tile: lane-dense multiple of 128; a second grid axis bounds
    # the [tile, tile_o] working set for large out_dim (v7x: 64 MiB VMEM).
    tile_o = min(O_pad, max(128, _round_up(int(col_tile), 128)))

    # Row tile: at least 2 row steps so the "parallel" axis shards across both
    # v7x TensorCores; sublane-rounded; then clamped so the per-step footprint
    # (out dbuf + matmul intermediates) stays within the VMEM budget.
    tile = min(int(tile_n), max(8, _round_up(pl.cdiv(N, 2), 8)))
    max_block_elems = 3 * (1 << 19)          # ~1.5M f32 elems per [tile, tile_o]
    while tile > 64 and tile * tile_o > max_block_elems:
        tile = max(64, _round_up(tile // 2, 8))

    grid = (pl.cdiv(N, tile), pl.cdiv(O_pad, tile_o))

    out_isize = jnp.dtype(out_dtype).itemsize
    cost = pl.CostEstimate(
        flops=2 * N * Da * 2 * O_pad + 2 * N * O_pad,
        transcendentals=2 * N * O_pad,                 # exp + sin per element
        bytes_accessed=(N * D * jnp.dtype(x.dtype).itemsize
                        + N * O_pad * out_isize
                        + 2 * Da * O_pad * 4),
    )

    out = pl.pallas_call(
        gabor_kernel,
        out_shape=jax.ShapeDtypeStruct((N, O_pad), out_dtype),
        grid=grid,
        in_specs=[
            pl.BlockSpec((tile, D), lambda i, j: (i, 0)),      # x tile (reused over j)
            pl.BlockSpec((Da, tile_o), lambda i, j: (0, j)),   # exponent weights
            pl.BlockSpec((Da, tile_o), lambda i, j: (0, j)),   # linear weights
        ],
        out_specs=pl.BlockSpec((tile, tile_o), lambda i, j: (i, j)),
        compiler_params=pltpu.CompilerParams(
            dimension_semantics=("parallel", "parallel"),      # megacore on v7x
            vmem_limit_bytes=vmem_limit_bytes,
        ),
        cost_estimate=cost,
    )(x, params["we"], params["wl"])

    if trim_output and O_pad != O:
        # Extra HBM pass only when out_dim isn't a multiple of 128; keep
        # out_dim 128-aligned at the model level (or trim_output=False) to skip it.
        out = out[:, :O]
    return out


# ---------------------------------------------------------------------------
# Init (deterministic re-implementation of GaborLayer.__init__) and reference
# ---------------------------------------------------------------------------
def init_gabor_params(key, in_dim, out_dim, alpha, beta=1.0):
    k_mu, k_gamma, k_w, k_b = jax.random.split(key, 4)
    mu = jax.random.uniform(k_mu, (out_dim, in_dim), jnp.float32, -1.0, 1.0)
    gamma = jax.random.gamma(k_gamma, alpha, (out_dim,), jnp.float32) / beta
    bound = 1.0 / np.sqrt(in_dim)
    w = jax.random.uniform(k_w, (out_dim, in_dim), jnp.float32, -bound, bound)
    w = w * (128.0 * jnp.sqrt(gamma))[:, None]
    b = jax.random.uniform(k_b, (out_dim,), jnp.float32, -np.pi, np.pi)
    return mu, gamma, w, b


def gabor_ref(x, mu, w, b, gamma):
    """Pure-JAX reference matching the PyTorch forward."""
    norm = (jnp.sum(x**2, axis=1)[:, None]
            + jnp.sum(mu**2, axis=1)[None, :]
            - 2.0 * x @ mu.T)
    return jnp.exp(-gamma[None, :] / 2.0 * norm) * jnp.sin(x @ w.T + b[None, :])


if __name__ == "__main__":
    key = jax.random.PRNGKey(0)
    k_param, k_x = jax.random.split(key)

    in_dim, out_dim = 4, 32
    N = 64
    alpha, beta = 6.0, 1.0

    mu, gamma, w, b = init_gabor_params(k_param, in_dim, out_dim, alpha, beta)
    prepared = prepare_gabor_params(mu, gamma, w, b)   # once, at "init" time
    x = jax.random.uniform(k_x, (N, in_dim), jnp.float32, -1.0, 1.0)

    out = gabor_layer(x, prepared)
    out = jax.block_until_ready(out)

    ref = gabor_ref(x, mu, w, b, gamma)
    np.testing.assert_allclose(np.asarray(out), np.asarray(ref),
                               rtol=5e-4, atol=5e-4)

    print("KERNEL_OK")
</pallas_src>

<mosaic_0001>
module attributes {stable_mosaic.version = 11 : i64} {
  func.func @gabor_kernel(%arg0: i32, %arg1: i32, %arg2: memref<32x4xf32, #tpu.memory_space<vmem>>, %arg3: memref<6x128xf32, #tpu.memory_space<vmem>>, %arg4: memref<6x128xf32, #tpu.memory_space<vmem>>, %arg5: memref<32x128xf32, #tpu.memory_space<vmem>>) attributes {dimension_semantics = [#tpu.dimension_semantics<parallel>, #tpu.dimension_semantics<parallel>], iteration_bounds = array<i64: 2, 1>, scalar_prefetch = 0 : i64, scratch_operands = 0 : i64, tpu.core_type = #tpu.core_type<tc>, window_params = [{transform_indices = @transform_0, window_bounds = array<i64: 32, 4>}, {transform_indices = @transform_1, window_bounds = array<i64: 6, 128>}, {transform_indices = @transform_2, window_bounds = array<i64: 6, 128>}, {transform_indices = @transform_3, window_bounds = array<i64: 32, 128>}]} {
    %c0 = arith.constant 0 : index
    %c0_0 = arith.constant 0 : index
    %0 = vector.load %arg2[%c0, %c0_0] : memref<32x4xf32, #tpu.memory_space<vmem>>, vector<32x4xf32>
    %1 = arith.mulf %0, %0 : vector<32x4xf32>
    %cst = arith.constant dense<0.000000e+00> : vector<32xf32>
    %2 = vector.multi_reduction <add>, %1, %cst [1] : vector<32x4xf32> to vector<32xf32>
    %3 = vector.shape_cast %2 : vector<32xf32> to vector<32x1xf32>
    %cst_1 = arith.constant 1.000000e+00 : f32
    %4 = vector.broadcast %cst_1 : f32 to vector<32x1xf32>
    %5 = tpu.concatenate %0, %3, %4 in 1 : vector<32x4xf32>, vector<32x1xf32>, vector<32x1xf32> -> vector<32x6xf32>
    %c0_2 = arith.constant 0 : index
    %c0_3 = arith.constant 0 : index
    %6 = vector.load %arg3[%c0_2, %c0_3] : memref<6x128xf32, #tpu.memory_space<vmem>>, vector<6x128xf32>
    %cst_4 = arith.constant dense<0.000000e+00> : vector<32x128xf32>
    %7 = tpu.matmul %5, %6, %cst_4 {dimension_numbers = #tpu.dot_dimension_numbers<[1], [0], [0], [1], [0, 0, 1, 1], [], []>} : vector<32x6xf32>, vector<6x128xf32>, vector<32x128xf32> -> vector<32x128xf32>
    %c0_5 = arith.constant 0 : index
    %c0_6 = arith.constant 0 : index
    %8 = vector.load %arg4[%c0_5, %c0_6] : memref<6x128xf32, #tpu.memory_space<vmem>>, vector<6x128xf32>
    %cst_7 = arith.constant dense<0.000000e+00> : vector<32x128xf32>
    %9 = tpu.matmul %5, %8, %cst_7 {dimension_numbers = #tpu.dot_dimension_numbers<[1], [0], [0], [1], [0, 0, 1, 1], [], []>} : vector<32x6xf32>, vector<6x128xf32>, vector<32x128xf32> -> vector<32x128xf32>
    %10 = math.exp %7 : vector<32x128xf32>
    %11 = math.sin %9 : vector<32x128xf32>
    %12 = arith.mulf %10, %11 : vector<32x128xf32>
    %c0_8 = arith.constant 0 : index
    %c0_9 = arith.constant 0 : index
    %13 = vector.load %arg5[%c0_8, %c0_9] : memref<32x128xf32, #tpu.memory_space<vmem>>, vector<32x128xf32>
    tpu.vector_store %arg5[%c0_8, %c0_9], %12 {strides = array<i32>} : memref<32x128xf32, #tpu.memory_space<vmem>>, vector<32x128xf32>,
    return
  }
  func.func @transform_0(%arg0: i32, %arg1: i32) -> (i32, i32) {
    %c0_i32 = arith.constant 0 : i32
    %c0_i32_0 = arith.constant 0 : i32
    return %arg0, %c0_i32 : i32, i32
  }
  func.func @transform_1(%arg0: i32, %arg1: i32) -> (i32, i32) {
    %c0_i32 = arith.constant 0 : i32
    %c0_i32_0 = arith.constant 0 : i32
    return %c0_i32, %arg1 : i32, i32
  }
  func.func @transform_2(%arg0: i32, %arg1: i32) -> (i32, i32) {
    %c0_i32 = arith.constant 0 : i32
    %c0_i32_0 = arith.constant 0 : i32
    return %c0_i32, %arg1 : i32, i32
  }
  func.func @transform_3(%arg0: i32, %arg1: i32) -> (i32, i32) {
    %c0_i32 = arith.constant 0 : i32
    return %arg0, %arg1 : i32, i32
  }
}

</mosaic_0001>

<bundles_post_ra>
// kernel: tpu_custom_call.1
= control target key start
LH: loop header
LB: loop body
LE: loop exit
PB: predicated region body
PF: predicated region fallthrough
CT: control target
= control target key end

     0   :  { %8 = vsyncpa [#allocation3], 0  ;;  %s1724_s0 = inlined_call_operand.vmem [shape: f32[64,4], index: 0, kind: input, shape index: {}]   ;;  %s1725_s1 = inlined_call_operand.vmem [shape: f32[6,128], index: 1, kind: input, shape index: {}]   ;;  %s1726_s2 = inlined_call_operand.vmem [shape: f32[6,128], index: 2, kind: input, shape index: {}]   ;;  %s1727_s3 = inlined_call_operand.hbm [shape: f32[64,128], index: 3, kind: output, shape index: {}]  }
   0x1   :  { %10 = vsyncpa [#allocation3 + $0x1], 0  ;;  %s1271_s12 = smov 0   ;;  %s1273_s13 = smov 0  }
   0x2   :  { %s1275_s14 = smov 0   ;;  %s1277_s15 = smov 0  }
   0x3   :  { %s1279_s16 = smov 0   ;;  %s1281_s17 = smov 0  }
   0x4 LB: > { %s991_s18 = sadd.s32 4294967295, %s1240_s17   ;;  %s992_s19 = sadd.s32 4294967294, %s1240_s17   ;;  %s1240_s17 = sphi %s1281_s17, %s16_s17   ;;  %s1236_s16 = sphi %s1279_s16, %s1742_s16   ;;  %s1232_s15 = sphi %s1277_s15, %s1741_s15   ;;  %s1228_s14 = sphi %s1275_s14, %s1740_s14   ;;  %s1224_s13 = sphi %s1273_s13, %s1739_s13   ;;  %s1220_s12 = sphi %s1271_s12, %s1738_s12  }
   0x5   : > { %s28_s20 = sadd.s32 1, %s1236_s16  ;;  %s115_s21 = sadd.s32 1, %s1228_s14 }
   0x6   : > { %p30_p0 = scmp.ge.s32.totalorder %s28_s20, 2  ;;  %p125_p1 = scmp.ne.s32.totalorder %s1228_s14, %s1224_s13 }
   0x7   : > { %p126_p2 = scmp.eq.s32.totalorder %s991_s18, 1  ;;  %p131_p3 = scmp.ne.s32.totalorder %s1224_s13, %s1220_s12 }
   0x8   : > { %s1744_s20 = smov (%p30_p0, %s28_s20), 0  ;;  %p132_p5 = scmp.eq.s32.totalorder %s992_s19, 1 }
   0x9   : > { %p1311_p4 = por %p126_p2, %p125_p1  ;;  %s110_s23 = ssub.s32 %s1236_s16, %s1744_s20 }
   0xa   : > { %p997_p6 = scmp.ge.s32.totalorder %s1240_s17, 1  ;;  %p113_p7 = scmp.eq.s32.totalorder %s110_s23, 0 }
   0xb   : > { %p1318_p8 = por %p132_p5, %p131_p3  ;;  %p173_p9 = scmp.lt.s32.totalorder %s1240_s17, 3 }
   0xc   : > { %s1324_s25 = scalar_select %p113_p7, %s1228_s14, %s115_s21  }
   0xd   : > { %p174_p10 = pnand %p997_p6, %p173_p9 }
   0xe   : > { %s999_s26 = sshll.u32 (!%p174_p10), %s1232_s15, 2  ;;  %vm228_vm0 = vcmask (!%p174_p10), 31744   ;;  %v250_v12 = vld [vmem:[%s1725_s1] sm:$0x3f] (!%p174_p10)  ;;  %vm264_vm1 = vcmask (!%p174_p10), 1045504   ;;  %vm245_vm2 = vcmask (!%p174_p10), 39936  }
   0xf   : > { %177 = sbr.rel (%p174_p10) target bundleno = 545 (0x221), region = 32  ;;  %p206_p11 = scmp.lt.s32.totalorder (!%p174_p10), %s999_s26, 7  ;;  %v353_v13 = vld [vmem:[%s1726_s2] sm:$0x3f] (!%p174_p10)  ;;  %1043 = vmatprep.subr.msk.mxu0 (!%p174_p10), %vm264_vm1, %v250_v12  ;;  %vm251_vm3 = vcmask (!%p174_p10), 48128  }
  0x10   : > { %1051 = vmatprep.subr.msk.mxu1 (!%p174_p10), %vm264_vm1, %v353_v13  ;;  %1044 = vmatpush3.msk.msra.mxu0 (!%p174_p10), %vm264_vm1, %v250_v12  ;;  %v1242_v56 = vmov (!%p174_p10), 683565275   ;;  %v1243_v58 = vmov (!%p174_p10), 2475754826   ;;  %v1244_v60 = vmov (!%p174_p10), 2131351028  }
  0x11   : > { %1052 = vmatpush3.msk.msra.mxu1 (!%p174_p10), %vm264_vm1, %v353_v13  ;;  %v1245_v62 = vmov (!%p174_p10), 2102212464   ;;  %s202_s8 = sand.u32 (!%p174_p10), 1, %s1224_s13   ;;  %s1032_s11 = sshll.u32 (!%p174_p10), %s1232_s15, 9 }
  0x12   : > { %s998_s9 = sshll.u32 (!%p174_p10), %s202_s8, 5  ;;  %s1671_s23 = scalar_lea.hbm (!%p174_p10), %s1727_s3, %s1032_s11 }
  0x13   : > { %s1606_s10 = scalar_lea.vmem (!%p174_p10), [#allocation2], %s998_s9  ;;  %s1678_s15 = scalar_lea.sflag (!%p174_p10), [#allocation3], %s202_s8 }
  0x14   : > { %s889_s18 = sshll.u32 (!%p174_p10), %s1606_s10, 4  ;;  %s1673_s18 = int_to_ptr.vmem [resolvable:$true] %s889_s18 }
  0x16   : > { %s1746_s26 = smov (!%p206_p11, %s999_s26), 7 }
  0x17   : > { %s1000_s27 = sshll.u32 %s1746_s26, 3  ;;  %s1162_s26 = scalar_lea.vmem %s1673_s18, 512 }
  0x18   : > { %s209_s30 = scalar_lea.vmem %s1724_s0, %s1000_s27  ;;  %p1163_p12 = scmp.ne.s32.totalorder %s1673_s18, %s1162_s26 }
  0x19   : > { %v220_v0 = vld [vmem:[%s209_s30] sm:$0xff]  ;;  %v222_v1 = vld [vmem:[%s209_s30 + $0x10] sm:$0xff]  ;;  %v221_v2 = vld [vmem:[%s209_s30 + $0x8] sm:$0xff]  ;;  %s1248_s27 = smov [#allocation2]  }
  0x1a   : > { %v224_v3 = vmul.f32 %v220_v0, %v220_v0  ;;  %v226_v4 = vmul.f32 %v222_v1, %v222_v1  ;;  %v225_v5 = vmul.f32 %v221_v2, %v221_v2  ;;  %v223_v6 = vld [vmem:[%s209_s30 + $0x18] sm:$0xff]  ;;  %p1164_p13 = pnand %p1163_p12, %p1311_p4  ;;  %s1166_s28 = sshll.u32 %s1248_s27, 4  ;;  %s1167_s28 = int_to_ptr.vmem [resolvable:$false] %s1166_s28 }
  0x1b   : > { %v227_v7 = vmul.f32 %v223_v6, %v223_v6  ;;  %s1168_s29 = scalar_lea.vmem %s1167_s28, 1024  ;;  %p1169_p1 = scmp.lt.s32.totalorder %s1673_s18, %s1167_s28 }
  0x1c   : > { %v229_v8 = vsel %vm228_vm0, %v224_v3, 0.0  ;;  %v235_v9 = vsel %vm228_vm0, %v226_v4, 0.0  ;;  %v232_v10 = vsel %vm228_vm0, %v225_v5, 0.0  ;;  %p1165_p0 = pneg %p1164_p13  ;;  %p1170_p2 = scmp.lt.s32.totalorder %s1168_s29, %s1162_s26 }
  0x1d   : > { %230 = vadd.xlane.f32.xlu0 %v229_v8  ;;  %236 = vadd.xlane.f32.xlu1 %v235_v9  ;;  %v238_v11 = vsel %vm228_vm0, %v227_v7, 0.0  ;;  %v1247_v7 = vmov 1326507024  }
  0x1e   : > { %p1171_p3 = por %p1170_p2, %p1169_p1 }
  0x20   : > { %p1172_p5 = pnand %p1171_p3, %p1165_p0 }
  0x21   : > { %233 = vadd.xlane.f32.xlu0 %v232_v10  ;;  %239 = vadd.xlane.f32.xlu1 %v238_v11 }
  0xaa   : > { %v231_v14 = vpop.xlane.xlu0 %230  ;;  %v237_v15 = vpop.xlane.xlu1 %236 }
  0xab   : > { %v241_v16 = vsel %vm228_vm0, %v220_v0, %v231_v14  ;;  %v243_v18 = vsel %vm228_vm0, %v222_v1, %v237_v15  ;;  %v1246_v0 = vmov 920167782  }
  0xac   : > { %v246_v17 = vsel %vm245_vm2, %v241_v16, 1.0  ;;  %v248_v21 = vsel %vm245_vm2, %v243_v18, 1.0 }
  0xad   : > { %1045 = vmatprep.mubr.msk.f32.mxu0 %vm251_vm3, %v246_v17  ;;  %1053 = vmatprep.mubr.msk.f32.mxu1 %vm251_vm3, %v246_v17 }
  0xae   : > { %v234_v19 = vpop.xlane.xlu0 %233  ;;  %v240_v20 = vpop.xlane.xlu1 %239 }
  0xaf   : > { %v242_v22 = vsel %vm228_vm0, %v221_v2, %v234_v19  ;;  %v244_v23 = vsel %vm228_vm0, %v223_v6, %v240_v20 }
  0xb0   : > { %v247_v24 = vsel %vm245_vm2, %v242_v22, 1.0  ;;  %v249_v25 = vsel %vm245_vm2, %v244_v23, 1.0 }
  0xb1   : > { %1046 = vmatmul.mubr.msk.f32.vlgmr.msra.gmra.mrb[0].mxu0 %vm251_vm3, %v247_v24  ;;  %1054 = vmatmul.mubr.msk.f32.vlgmr.msra.gmra.mrb[0].mxu1 %vm251_vm3, %v247_v24 }
  0xb2   : > { %1048 = vmatprep.mubr.msk.f32.mxu0 %vm251_vm3, %v248_v21  ;;  %1056 = vmatprep.mubr.msk.f32.mxu1 %vm251_vm3, %v248_v21 }
  0xb5   : > { %1049 = vmatmul.mubr.msk.f32.gmra.mrb[2].mxu0 %vm251_vm3, %v249_v25  ;;  %1057 = vmatmul.mubr.msk.f32.gmra.mrb[2].mxu1 %vm251_vm3, %v249_v25 }
 0x184   : > { %v1356_v26 = vpop.f32.mrb[0].mxu0  ;;  %v1358_v27 = vpop.f32.mrb[0].mxu1 }
 0x185   : > { %v554_v28 = vand.u32 2147483647, %v1358_v27  ;;  %v557_v29 = vand.u32 2139095040, %v1358_v27  ;;  %v1362_v30 = vpop.f32.mrb[1].mxu0  ;;  %v1364_v31 = vpop.f32.mrb[1].mxu1  ;;  %vm556_vm1 = vcmp.lt.s32.totalorder %v1358_v27, 0 }
 0x186   : > { %v450_v34 = vand.u32 2147483647, %v1364_v31  ;;  %v453_v35 = vand.u32 2139095040, %v1364_v31 }
 0x187   : > { %v558_v32 = vshrl.u32 %v557_v29, 23  ;;  %v561_v33 = vand.u32 8388607, %v554_v28  ;;  %vm1471_vm2 = vcmp.le.f32.partialorder %v554_v28, 0.7853982 }
 0x188   : > { %v1370_v37 = vpop.f32.mrb[2].mxu0  ;;  %v1372_v38 = vpop.f32.mrb[2].mxu1  ;;  %v454_v39 = vshrl.u32 %v453_v35, 23  ;;  %v457_v40 = vand.u32 8388607, %v450_v34 }
 0x189   : > { %v1015_v36 = vadd.s32 4294967169, %v558_v32  ;;  %v1376_v41 = vpop.f32.mrb[3].mxu0  ;;  %v562_v43 = vor.u32 8388608, %v561_v33  ;;  %v765_v46 = vand.u32 2139095040, %v1372_v38  ;;  %v1379_v47 = vpop.f32.mrb[3].mxu1 }
 0x18a   : > { %v1011_v44 = vadd.s32 4294967169, %v454_v39  ;;  %v458_v45 = vor.u32 8388608, %v457_v40 }
 0x18b   : > { %v564_v42 = vadd.s32 1, %v1015_v36  ;;  %v1381_v52 = vshll.u32 %v562_v43, 8  ;;  %v766_v54 = vshrl.u32 %v765_v46, 23 }
 0x18c   : > { %v460_v49 = vadd.s32 1, %v1011_v44  ;;  %v1383_v53 = vshll.u32 %v458_v45, 8 }
 0x18d   : > { %vm565_vm4 = vcmp.gt.s32.totalorder %v564_v42, 0  ;;  %v1023_v32 = vadd.s32 4294967169, %v766_v54 }
 0x18e   : > { %v566_v48 = vsel %vm565_vm4, %v564_v42, 0  ;;  %vm461_vm5 = vcmp.gt.s32.totalorder %v460_v49, 0 }
 0x18f   : > { %v567_v50 = vshrl.u32 %v566_v48, 5  ;;  %v568_v51 = vand.u32 31, %v566_v48  ;;  %v462_v12 = vsel %vm461_vm5, %v460_v49, 0 }
 0x190   : > { %v464_v15 = vand.u32 31, %v462_v12  ;;  %v463_v36 = vshrl.u32 %v462_v12, 5 }
 0x191   : > { %v569_v55 = vsub.s32 32, %v568_v51  ;;  %v571_v57 = vshll.u32 %v1242_v56, %v568_v51  ;;  %v574_v59 = vshll.u32 %v1243_v58, %v568_v51  ;;  %v577_v61 = vshll.u32 %v1244_v60, %v568_v51 }
 0x192   : > { %v580_v63 = vshll.u32 %v1245_v62, %v568_v51  ;;  %v583_v1 = vshll.u32 %v1246_v0, %v568_v51  ;;  %vm586_vm6 = vcmp.lt.s32.totalorder %v567_v50, 1  ;;  %vm587_vm7 = vcmp.lt.s32.totalorder %v567_v50, 2 }
 0x193   : > { %v572_v2 = vshrl.u32 %v1243_v58, %v569_v55  ;;  %v575_v3 = vshrl.u32 %v1244_v60, %v569_v55  ;;  %v578_v4 = vshrl.u32 %v1245_v62, %v569_v55  ;;  %v570_v5 = vshrl.u32 %v1242_v56, %v569_v55 }
 0x194   : > { %v581_v6 = vshrl.u32 %v1246_v0, %v569_v55  ;;  %v584_v8 = vshrl.u32 %v1247_v7, %v569_v55  ;;  %vm588_vm8 = vcmp.lt.s32.totalorder %v567_v50, 3  ;;  %vm589_vm9 = vcmp.lt.s32.totalorder %v567_v50, 4 }
 0x195   : > { %v573_v9 = vor.u32 %v572_v2, %v571_v57  ;;  %v576_v10 = vor.u32 %v575_v3, %v574_v59  ;;  %v579_v11 = vor.u32 %v578_v4, %v577_v61  ;;  %v465_v23 = vsub.s32 32, %v464_v15 }
 0x196   : > { %v582_v13 = vor.u32 %v581_v6, %v580_v63  ;;  %v585_v14 = vor.u32 %v584_v8, %v583_v1  ;;  %v467_v39 = vshll.u32 %v1242_v56, %v464_v15  ;;  %v470_v48 = vshll.u32 %v1243_v58, %v464_v15 }
 0x197   : > { %v590_v16 = vsel %vm586_vm6, %v570_v5, %v573_v9  ;;  %v591_v17 = vsel %vm589_vm9, %v579_v11, 2102212464  ;;  %v594_v18 = vsel %vm586_vm6, %v573_v9, %v576_v10  ;;  %v598_v19 = vsel %vm586_vm6, %v576_v10, %v579_v11 }
 0x198   : > { %v592_v20 = vsel %vm588_vm8, %v576_v10, %v591_v17  ;;  %v595_v21 = vsel %vm589_vm9, %v582_v13, 920167782  ;;  %v599_v22 = vsel %vm589_vm9, %v585_v14, 1326507024  ;;  %v468_v46 = vshrl.u32 %v1243_v58, %v465_v23 }
 0x199   : > { %v593_v24 = vsel %vm587_vm7, %v590_v16, %v592_v20  ;;  %v596_v25 = vsel %vm588_vm8, %v579_v11, %v595_v21  ;;  %v600_v29 = vsel %vm588_vm8, %v582_v13, %v599_v22  ;;  %v471_v49 = vshrl.u32 %v1244_v60, %v465_v23 }
 0x19a   : > { %v597_v33 = vsel %vm587_vm7, %v594_v18, %v596_v25  ;;  %v601_v35 = vsel %vm587_vm7, %v598_v19, %v600_v29  ;;  %v609_v45 = vmul.u32 %v1381_v52, %v593_v24  ;;  %v473_v50 = vshll.u32 %v1244_v60, %v464_v15 }
 0x19b   : > { %v1408_v40 = vmul.u32.u64.low %v1381_v52, %v601_v35  ;;  %v1409_v42 = vmul.u32.u64.high %v1381_v52, %v601_v35, %v1408_v40  ;;  %v1412_v43 = vmul.u32.u64.low %v1381_v52, %v597_v33  ;;  %v1413_v44 = vmul.u32.u64.high %v1381_v52, %v597_v33, %v1412_v43 }
 0x19c   : > { %v474_v51 = vshrl.u32 %v1245_v62, %v465_v23  ;;  %v476_v54 = vshll.u32 %v1245_v62, %v464_v15  ;;  %v477_v55 = vshrl.u32 %v1246_v0, %v465_v23  ;;  %v469_v57 = vor.u32 %v468_v46, %v467_v39 }
 0x19d   : > { %v472_v59 = vor.u32 %v471_v49, %v470_v48  ;;  %v479_v61 = vshll.u32 %v1246_v0, %v464_v15  ;;  %v480_v52 = vshrl.u32 %v1247_v7, %v465_v23  ;;  %vm611_vm10 = vc.u32 %v1409_v42, %v1412_v43 }
 0x19e   : > { %v612_v63 = vadd.s32 1, %v1413_v44  ;;  %v466_v1 = vshrl.u32 %v1242_v56, %v465_v23  ;;  %v475_v2 = vor.u32 %v474_v51, %v473_v50  ;;  %v478_v3 = vor.u32 %v477_v55, %v476_v54 }
 0x19f   : > { %v481_v4 = vor.u32 %v480_v52, %v479_v61  ;;  %vm482_vm11 = vcmp.lt.s32.totalorder %v463_v36, 1  ;;  %vm483_vm12 = vcmp.lt.s32.totalorder %v463_v36, 2  ;;  %vm484_vm13 = vcmp.lt.s32.totalorder %v463_v36, 3 }
 0x1a0   : > { %v613_v5 = vsel %vm611_vm10, %v612_v63, %v1413_v44  ;;  %vm485_vm14 = vcmp.lt.s32.totalorder %v463_v36, 4  ;;  %v490_v6 = vsel %vm482_vm11, %v469_v57, %v472_v59  ;;  %v494_v11 = vsel %vm482_vm11, %v472_v59, %v475_v2 }
 0x1a1   : > { %v614_v8 = vadd.s32 %v613_v5, %v609_v45  ;;  %v487_v9 = vsel %vm485_vm14, %v475_v2, 2102212464  ;;  %v491_v10 = vsel %vm485_vm14, %v478_v3, 920167782  ;;  %v486_v12 = vsel %vm482_vm11, %v466_v1, %v469_v57 }
 0x1a2   : > { %v492_v13 = vsel %vm484_vm13, %v475_v2, %v491_v10  ;;  %v495_v14 = vsel %vm485_vm14, %v481_v4, 1326507024  ;;  %v772_v15 = vadd.s32 1, %v1023_v32  ;;  %v488_v17 = vsel %vm484_vm13, %v472_v59, %v487_v9 }
 0x1a3   : > { %v615_v16 = vadd.s32 536870912, %v614_v8  ;;  %v493_v18 = vsel %vm483_vm12, %v490_v6, %v492_v13  ;;  %v496_v19 = vsel %vm484_vm13, %v478_v3, %v495_v14  ;;  %v762_v23 = vand.u32 2147483647, %v1372_v38 }
 0x1a4   : > { %v497_v20 = vsel %vm483_vm12, %v494_v11, %v496_v19  ;;  %v1434_v21 = vmul.u32.u64.low %v1383_v53, %v493_v18  ;;  %v1435_v22 = vmul.u32.u64.high %v1383_v53, %v493_v18, %v1434_v21  ;;  %vm773_vm15 = vcmp.gt.s32.totalorder %v772_v15, 0 }
 0x1a5   : > { %v616_v24 = vshrl.u32 %v615_v16, 30  ;;  %v1440_v25 = vmul.u32.u64.low %v1383_v53, %v497_v20  ;;  %v1441_v29 = vmul.u32.u64.high %v1383_v53, %v497_v20, %v1440_v25  ;;  %v489_v32 = vsel %vm483_vm12, %v486_v12, %v488_v17 }
 0x1a6   : > { %v774_v33 = vsel %vm773_vm15, %v772_v15, 0  ;;  %v444_v40 = vmul.f32 1.442695, %v1356_v26  ;;  %v508_v44 = vadd.s32 1, %v1435_v22  ;;  %v505_v46 = vmul.u32 %v1383_v53, %v489_v32 }
 0x1a7   : > { %v617_v35 = vshll.u32 %v616_v24, 30  ;;  %v776_v39 = vand.u32 31, %v774_v33  ;;  %vm507_vm0 = vc.u32 %v1441_v29, %v1434_v21  ;;  %v1451_v48 = vand.u32 8388607, %v762_v23 }
 0x1a8   : > { %v509_v36 = vsel %vm507_vm0, %v508_v44, %v1435_v22  ;;  %1138 = vpow2.f32 %v444_v40  ;;  %v610_v53 = vadd.s32 %v1412_v43, %v1409_v42  ;;  %v640_v57 = vsub.s32 4, %v616_v24 }
 0x1a9   : > { %v618_v45 = vsub.s32 %v614_v8, %v617_v35  ;;  %v777_v49 = vsub.s32 32, %v776_v39  ;;  %v510_v51 = vadd.s32 %v509_v36, %v505_v46  ;;  %v770_v55 = vor.u32 8388608, %v1451_v48 }
 0x1aa   : > { %v1458_v59 = vshrl.u32 %v774_v33, 5  ;;  %v779_v4 = vshll.u32 %v1242_v56, %v776_v39  ;;  %v785_v5 = vshll.u32 %v1244_v60, %v776_v39  ;;  %v661_v42 = vand.u32 2139095040, %v1379_v47 }
 0x1ab   : > { %v620_v50 = vsub.s32 0, %v618_v45  ;;  %v511_v54 = vadd.s32 536870912, %v510_v51  ;;  %v786_v61 = vshrl.u32 %v1245_v62, %v777_v49  ;;  %v780_v63 = vshrl.u32 %v1243_v58, %v777_v49 }
 0x1ac   : > { %v783_v1 = vshrl.u32 %v1244_v60, %v777_v49  ;;  %v789_v2 = vshrl.u32 %v1246_v0, %v777_v49  ;;  %v782_v8 = vshll.u32 %v1243_v58, %v776_v39  ;;  %v788_v9 = vshll.u32 %v1245_v62, %v776_v39 }
 0x1ad   : > { %v1016_v26 = vmin.u32 %v620_v50, %v618_v45  ;;  %v1464_v3 = vshrl.u32 %v511_v54, 30  ;;  %v792_v10 = vshrl.u32 %v1247_v7, %v777_v49  ;;  %v641_v11 = vsel %vm556_vm1, %v640_v57, %v616_v24 }
 0x1ae   : > { %v787_v13 = vor.u32 %v786_v61, %v785_v5  ;;  %v791_v14 = vshll.u32 %v1246_v0, %v776_v39  ;;  %v781_v28 = vor.u32 %v780_v63, %v779_v4  ;;  %v784_v15 = vor.u32 %v783_v1, %v782_v8 }
 0x1af   : > { %v622_v52 = vclz %v1016_v26  ;;  %v513_v12 = vshll.u32 %v1464_v3, 30  ;;  %v790_v16 = vor.u32 %v789_v2, %v788_v9  ;;  %v778_v19 = vshrl.u32 %v1242_v56, %v777_v49 }
 0x1b0   : > { %v793_v20 = vor.u32 %v792_v10, %v791_v14  ;;  %vm794_vm4 = vcmp.lt.s32.totalorder %v1458_v59, 1  ;;  %vm797_vm5 = vcmp.lt.s32.totalorder %v1458_v59, 4  ;;  %vm796_vm6 = vcmp.lt.s32.totalorder %v1458_v59, 3 }
 0x1b1   : > { %v1017_v6 = vadd.s32 4294967294, %v622_v52  ;;  %v1482_v18 = vsub.s32 %v510_v51, %v513_v12  ;;  %v799_v33 = vsel %vm797_vm5, %v787_v13, 2102212464  ;;  %v802_v44 = vsel %vm794_vm4, %v781_v28, %v784_v15 }
 0x1b2   : > { %v1489_v35 = vpop.eup %1138  ;;  %v803_v46 = vsel %vm797_vm5, %v790_v16, 920167782  ;;  %v807_v49 = vsel %vm797_vm5, %v793_v20, 1326507024  ;;  %vm795_vm7 = vcmp.lt.s32.totalorder %v1458_v59, 2  ;;  %v643_v54 = vsel %vm1471_vm2, 0, %v641_v11 }
 0x1b3   : > { %vm1018_vm3 = vcmp.lt.s32.totalorder %v1017_v6, 0  ;;  %v516_v32 = vsub.s32 0, %v1482_v18  ;;  %v804_v36 = vsel %vm796_vm6, %v787_v13, %v803_v46  ;;  %v808_v26 = vsel %vm796_vm6, %v790_v16, %v807_v49 }
 0x1b4   : > { %v625_v17 = vsel %vm1018_vm3, 0, %v1017_v6  ;;  %v805_v57 = vsel %vm795_vm7, %v802_v44, %v804_v36  ;;  %v810_v61 = vshll.u32 %v770_v55, 8  ;;  %v798_v63 = vsel %vm794_vm4, %v778_v19, %v781_v28 }
 0x1b5   : > { %v626_v22 = vsub.s32 32, %v625_v17  ;;  %v630_v25 = vsub.s32 4294967266, %v625_v17  ;;  %v627_v24 = vshll.u32 %v618_v45, %v625_v17  ;;  %v1012_v48 = vmin.u32 %v516_v32, %v1482_v18 }
 0x1b6   : > { %v806_v45 = vsel %vm794_vm4, %v784_v15, %v787_v13  ;;  %v800_v1 = vsel %vm796_vm6, %v784_v15, %v799_v33  ;;  %v662_v8 = vshrl.u32 %v661_v42, 23  ;;  %v442_v55 = vmul.f32 1.442695, %v1362_v30 }
 0x1b7   : > { %v628_v39 = vshrl.u32 %v610_v53, %v626_v22  ;;  %v631_v40 = vadd.s32 127, %v630_v25  ;;  %v518_v53 = vclz %v1012_v48  ;;  %v809_v2 = vsel %vm795_vm7, %v806_v45, %v808_v26 }
 0x1b8   : > { %v1511_v5 = vmul.u32.u64.low %v810_v61, %v809_v2  ;;  %v1512_v6 = vmul.u32.u64.high %v810_v61, %v809_v2, %v1511_v5  ;;  %v1514_v11 = vmul.u32.u64.low %v810_v61, %v805_v57  ;;  %v1515_v12 = vmul.u32.u64.high %v810_v61, %v805_v57, %v1514_v11 }
 0x1b9   : > { %v629_v50 = vor.u32 %v628_v39, %v627_v24  ;;  %v632_v51 = vshll.u32 %v631_v40, 23  ;;  %v1013_v4 = vadd.s32 4294967294, %v518_v53  ;;  %vm452_vm8 = vcmp.lt.s32.totalorder %v1364_v31, 0 }
 0x1ba   : > { %v1019_v13 = vadd.s32 4294967169, %v662_v8  ;;  %v506_v28 = vadd.s32 %v1434_v21, %v1441_v29  ;;  %v801_v42 = vsel %vm795_vm7, %v798_v63, %v800_v1  ;;  %v647_v16 = vadd.s32 3, %v643_v54 }
 0x1bb   : > { %v633_v52 = vor.u32 4788187, %v632_v51  ;;  %v636_v10 = vcvt.s32.f32 %v629_v50  ;;  %vm1014_vm9 = vcmp.lt.s32.totalorder %v1013_v4, 0  ;;  %v536_v20 = vsub.s32 4, %v1464_v3 }
 0x1bc   : > { %v521_v15 = vsel %vm1014_vm9, 0, %v1013_v4  ;;  %vm819_vm10 = vc.u32 %v1512_v6, %v1514_v11  ;;  %v820_v30 = vadd.s32 1, %v1515_v12  ;;  %v668_v25 = vadd.s32 1, %v1019_v13 }
 0x1bd   : > { %v634_v9 = vand.u32 2147483647, %v633_v52  ;;  %v522_v17 = vsub.s32 32, %v521_v15  ;;  %v526_v19 = vsub.s32 4294967266, %v521_v15  ;;  %v523_v24 = vshll.u32 %v1482_v18, %v521_v15 }
 0x1be   : > { %v817_v29 = vmul.u32 %v810_v61, %v801_v42  ;;  %v821_v33 = vsel %vm819_vm10, %v820_v30, %v1515_v12  ;;  %v658_v39 = vand.u32 2147483647, %v1379_v47  ;;  %vm669_vm11 = vcmp.gt.s32.totalorder %v668_v25, 0 }
 0x1bf   : > { %v637_v14 = vmul.f32 %v636_v10, %v634_v9  ;;  %v524_v32 = vshrl.u32 %v506_v28, %v522_v17  ;;  %v527_v21 = vadd.s32 127, %v526_v19  ;;  %v537_v18 = vsel %vm452_vm8, %v536_v20, %v1464_v3 }
 0x1c0   : > { %v822_v48 = vadd.s32 %v821_v33, %v817_v29  ;;  %v670_v36 = vsel %vm669_vm11, %v668_v25, 0  ;;  %v1539_v45 = vand.u32 3, %v647_v16  ;;  %vm1543_vm12 = vcmp.le.f32.partialorder %v450_v34, 0.7853982 }
 0x1c1   : > { %v638_v22 = vxor.u32 2147483648, %v637_v14  ;;  %v525_v44 = vor.u32 %v524_v32, %v523_v24  ;;  %v528_v46 = vshll.u32 %v527_v21, 23  ;;  %v665_v51 = vand.u32 8388607, %v658_v39 }
 0x1c2   : > { %v823_v50 = vadd.s32 536870912, %v822_v48  ;;  %v672_v26 = vand.u32 31, %v670_v36  ;;  %v539_v3 = vsel %vm1543_vm12, 0, %v537_v18  ;;  %vm650_vm13 = vcmp.eq.s32.totalorder %v1539_v45, 0 }
 0x1c3   : > { %v639_v59 = vsel %vm556_vm1, %v638_v22, %v637_v14  ;;  %v529_v49 = vor.u32 4788187, %v528_v46  ;;  %v532_v53 = vcvt.s32.f32 %v525_v44  ;;  %vm649_vm14 = vcmp.lt.s32.totalorder %v1539_v45, 2 }
 0x1c4   : > { %v642_v40 = vsel %vm1471_vm2, %v1358_v27, %v639_v59  ;;  %v1551_v57 = vshrl.u32 %v823_v50, 30  ;;  %v673_v61 = vsub.s32 32, %v672_v26  ;;  %v675_v52 = vshll.u32 %v1242_v56, %v672_v26 }
 0x1c5   : > { %1140 = vcosq.f32 %v642_v40  ;;  %v530_v54 = vand.u32 2147483647, %v529_v49  ;;  %v678_v63 = vshll.u32 %v1243_v58, %v672_v26  ;;  %v681_v34 = vshll.u32 %v1244_v60, %v672_v26 }
 0x1c6   : > { %1142 = vsinq.f32 %v642_v40  ;;  %v825_v2 = vshll.u32 %v1551_v57, 30  ;;  %v684_v4 = vshll.u32 %v1245_v62, %v672_v26  ;;  %v674_v5 = vshrl.u32 %v1242_v56, %v673_v61 }
 0x1c7   : > { %1144 = vpow2.f32 %v442_v55  ;;  %v533_v1 = vmul.f32 %v532_v53, %v530_v54  ;;  %v676_v8 = vshrl.u32 %v1243_v58, %v673_v61  ;;  %v679_v9 = vshrl.u32 %v1244_v60, %v673_v61 }
 0x1c8   : > { %v682_v10 = vshrl.u32 %v1245_v62, %v673_v61  ;;  %vm646_vm15 = vweird.f32 %v1358_v27  ;;  %v543_v55 = vadd.s32 3, %v539_v3  ;;  %v1565_v13 = vsub.s32 %v822_v48, %v825_v2 }
 0x1c9   : > { %v534_v12 = vxor.u32 2147483648, %v533_v1  ;;  %v685_v14 = vshrl.u32 %v1246_v0, %v673_v61  ;;  %v666_v28 = vor.u32 8388608, %v665_v51  ;;  %v677_v15 = vor.u32 %v676_v8, %v675_v52 }
 0x1ca   : > { %v680_v42 = vor.u32 %v679_v9, %v678_v63  ;;  %v683_v16 = vor.u32 %v682_v10, %v681_v34  ;;  %v828_v58 = vsub.s32 0, %v1565_v13  ;;  %v671_v60 = vshrl.u32 %v670_v36, 5 }
 0x1cb   : > { %v535_v56 = vsel %vm452_vm8, %v534_v12, %v533_v1  ;;  %v686_v17 = vor.u32 %v685_v14, %v684_v4  ;;  %vm653_vm0 = vcmp.eq.s32.totalorder %v1539_v45, 2  ;;  %v687_v20 = vshll.u32 %v1246_v0, %v672_v26 }
 0x1cc   : > { %v538_v19 = vsel %vm1543_vm12, %v1364_v31, %v535_v56  ;;  %v688_v22 = vshrl.u32 %v1247_v7, %v673_v61  ;;  %v1578_v24 = vand.u32 3, %v543_v55  ;;  %v1024_v32 = vmin.u32 %v828_v58, %v1565_v13 }
 0x1cd   : > { %1146 = vcosq.f32 %v538_v19  ;;  %v1583_v33 = vshll.u32 %v666_v28, 8  ;;  %v818_v0 = vadd.s32 %v1514_v11, %v1512_v6  ;;  %vm690_vm1 = vcmp.lt.s32.totalorder %v671_v60, 1 }
 0x1ce   : > { %1148 = vsinq.f32 %v538_v19  ;;  %v689_v59 = vor.u32 %v688_v22, %v687_v20  ;;  %v830_v7 = vclz %v1024_v32  ;;  %vm691_vm2 = vcmp.lt.s32.totalorder %v671_v60, 2 }
 0x1cf   : > { %v1141_v62 = vpop.eup %1140  ;;  %vm692_vm3 = vcmp.lt.s32.totalorder %v671_v60, 3  ;;  %vm693_vm4 = vcmp.lt.s32.totalorder %v671_v60, 4  ;;  %v694_v18 = vsel %vm690_vm1, %v674_v5, %v677_v15  ;;  %v698_v11 = vsel %vm690_vm1, %v677_v15, %v680_v42 }
 0x1d0   : > { %v1143_v30 = vpop.eup %1142  ;;  %v654_v25 = vxor.u32 2147483648, %v1141_v62  ;;  %v1025_v48 = vadd.s32 4294967294, %v830_v7  ;;  %v695_v36 = vsel %vm693_vm4, %v683_v16, 2102212464  ;;  %v699_v50 = vsel %vm693_vm4, %v686_v17, 920167782 }
 0x1d1   : > { %v1581_v21 = vpop.eup %1144  ;;  %v651_v29 = vxor.u32 2147483648, %v1143_v30  ;;  %v696_v6 = vsel %vm692_vm3, %v680_v42, %v695_v36  ;;  %v700_v51 = vsel %vm692_vm3, %v683_v16, %v699_v50  ;;  %v702_v53 = vsel %vm690_vm1, %v680_v42, %v683_v16 }
 0x1d2   : > { %v655_v40 = vsel %vm653_vm0, %v654_v25, %v1143_v30  ;;  %vm1026_vm5 = vcmp.lt.s32.totalorder %v1025_v48, 0  ;;  %v697_v45 = vsel %vm691_vm2, %v694_v18, %v696_v6  ;;  %v701_v54 = vsel %vm691_vm2, %v698_v11, %v700_v51 }
 0x1d3   : > { %v652_v44 = vsel %vm650_vm13, %v1141_v62, %v651_v29  ;;  %v833_v26 = vsel %vm1026_vm5, 0, %v1025_v48  ;;  %v703_v27 = vsel %vm693_vm4, %v689_v59, 1326507024  ;;  %v713_v2 = vmul.u32 %v1583_v33, %v697_v45 }
 0x1d4   : > { %v656_v46 = vsel %vm649_vm14, %v652_v44, %v655_v40  ;;  %v834_v3 = vsub.s32 32, %v833_v26  ;;  %v835_v61 = vshll.u32 %v1565_v13, %v833_v26  ;;  %v704_v52 = vsel %vm692_vm3, %v686_v17, %v703_v27 }
 0x1d5   : > { %v657_v49 = vsel %vm646_vm15, nan, %v656_v46  ;;  %v705_v63 = vsel %vm691_vm2, %v702_v53, %v704_v52  ;;  %v1613_v34 = vmul.u32.u64.low %v1583_v33, %v701_v54  ;;  %v1614_v1 = vmul.u32.u64.high %v1583_v33, %v701_v54, %v1613_v34 }
 0x1d6   : > { %v867_v43 = vmul.f32 %v1489_v35, %v657_v49  ;;  %v838_v35 = vsub.s32 4294967266, %v833_v26  ;;  %v836_v5 = vshrl.u32 %v818_v0, %v834_v3  ;;  %vm549_vm6 = vcmp.eq.s32.totalorder %v1578_v24, 2 }
 0x1d7   : > { %v1147_v4 = vpop.eup %1146  ;;  %v1618_v9 = vmul.u32.u64.low %v1583_v33, %v705_v63  ;;  %v1619_v10 = vmul.u32.u64.high %v1583_v33, %v705_v63, %v1618_v9  ;;  %vm546_vm7 = vcmp.eq.s32.totalorder %v1578_v24, 0  ;;  %v716_v42 = vadd.s32 1, %v1614_v1 }
 0x1d8   : > { %871 = vst [vmem:[%s1606_s10 + $0x8] sm:$0xff] %v867_v43  ;;  %v839_v8 = vadd.s32 127, %v838_v35  ;;  %v1149_v12 = vpop.eup %1148  ;;  %v550_v55 = vxor.u32 2147483648, %v1147_v4  ;;  %v837_v14 = vor.u32 %v836_v5, %v835_v61  ;;  %vm545_vm8 = vcmp.lt.s32.totalorder %v1578_v24, 2 }
 0x1d9   : > { %v547_v13 = vxor.u32 2147483648, %v1149_v12  ;;  %v714_v58 = vadd.s32 %v1613_v34, %v1619_v10  ;;  %vm542_vm9 = vweird.f32 %v1364_v31  ;;  %vm715_vm10 = vc.u32 %v1619_v10, %v1613_v34 }
 0x1da   : > { %v840_v28 = vshll.u32 %v839_v8, 23  ;;  %v551_v15 = vsel %vm549_vm6, %v550_v55, %v1149_v12  ;;  %v844_v19 = vcvt.s32.f32 %v837_v14  ;;  %v717_v20 = vsel %vm715_vm10, %v716_v42, %v1614_v1 }
 0x1db   : > { %v548_v16 = vsel %vm546_vm7, %v1147_v4, %v547_v13  ;;  %v718_v30 = vadd.s32 %v717_v20, %v713_v2  ;;  %v848_v24 = vsub.s32 4, %v1551_v57  ;;  %vm764_vm11 = vcmp.lt.s32.totalorder %v1372_v38, 0 }
 0x1dc   : > { %v841_v56 = vor.u32 4788187, %v840_v28  ;;  %v552_v60 = vsel %vm545_vm8, %v548_v16, %v551_v15  ;;  %vm1635_vm12 = vcmp.le.f32.partialorder %v762_v23, 0.7853982  ;;  %vm1645_vm13 = vcmp.le.f32.partialorder %v658_v39, 0.7853982 }
 0x1dd   : > { %v553_v17 = vsel %vm542_vm9, nan, %v552_v60  ;;  %v719_v32 = vadd.s32 536870912, %v718_v30  ;;  %v849_v40 = vsel %vm764_vm11, %v848_v24, %v1551_v57  ;;  %vm660_vm14 = vcmp.lt.s32.totalorder %v1379_v47, 0 }
 0x1de   : > { %v842_v62 = vand.u32 2147483647, %v841_v56  ;;  %v866_v22 = vmul.f32 %v1581_v21, %v553_v17  ;;  %v851_v23 = vsel %vm1635_vm12, 0, %v849_v40  ;;  %v448_v48 = vmul.f32 1.442695, %v1370_v37 }
 0x1df   : > { %v720_v31 = vshrl.u32 %v719_v32, 30  ;;  %v855_v39 = vadd.s32 3, %v851_v23  ;;  %vm854_vm2 = vweird.f32 %v1372_v38  ;;  %v446_v14 = vmul.f32 1.442695, %v1376_v41 }
 0x1e0   : > { %v845_v25 = vmul.f32 %v844_v19, %v842_v62  ;;  %870 = vst [vmem:[%s1606_s10] sm:$0xff] %v866_v22  ;;  %vm750_vm7 = vweird.f32 %v1379_v47 }
 0x1e1   : > { %v721_v0 = vshll.u32 %v720_v31, 30  ;;  %v744_v7 = vsub.s32 4, %v720_v31  ;;  %v856_v11 = vand.u32 3, %v855_v39 }
 0x1e2   : > { %v846_v29 = vxor.u32 2147483648, %v845_v25 }
 0x1e3   : > { %v722_v57 = vsub.s32 %v718_v30, %v721_v0  ;;  %v745_v46 = vsel %vm660_vm14, %v744_v7, %v720_v31  ;;  %vm861_vm0 = vcmp.eq.s32.totalorder %v856_v11, 2  ;;  %vm858_vm1 = vcmp.eq.s32.totalorder %v856_v11, 0 }
 0x1e4   : > { %v847_v33 = vsel %vm764_vm11, %v846_v29, %v845_v25  ;;  %v747_v18 = vsel %vm1645_vm13, 0, %v745_v46  ;;  %vm857_vm3 = vcmp.lt.s32.totalorder %v856_v11, 2 }
 0x1e5   : > { %v850_v21 = vsel %vm1635_vm12, %v1372_v38, %v847_v33  ;;  %v724_v36 = vsub.s32 0, %v722_v57  ;;  %v751_v28 = vadd.s32 3, %v747_v18 }
 0x1e6   : > { %1150 = vcosq.f32 %v850_v21 }
 0x1e7   : > { %1152 = vsinq.f32 %v850_v21  ;;  %v1020_v49 = vmin.u32 %v724_v36, %v722_v57  ;;  %v752_v15 = vand.u32 3, %v751_v28 }
 0x1e8   : > { %1154 = vpow2.f32 %v448_v48 }
 0x1e9   : > { %v726_v6 = vclz %v1020_v49  ;;  %vm757_vm4 = vcmp.eq.s32.totalorder %v752_v15, 2  ;;  %vm754_vm5 = vcmp.eq.s32.totalorder %v752_v15, 0  ;;  %vm753_vm6 = vcmp.lt.s32.totalorder %v752_v15, 2 }
 0x1eb   : > { %v1021_v50 = vadd.s32 4294967294, %v726_v6 }
 0x1ed   : > { %vm1022_vm15 = vcmp.lt.s32.totalorder %v1021_v50, 0 }
 0x1ee   : > { %v729_v54 = vsel %vm1022_vm15, 0, %v1021_v50 }
 0x1ef   : > { %v730_v53 = vsub.s32 32, %v729_v54  ;;  %v734_v27 = vsub.s32 4294967266, %v729_v54  ;;  %v731_v35 = vshll.u32 %v722_v57, %v729_v54 }
 0x1f0   : > { %v1151_v43 = vpop.eup %1150 }
 0x1f1   : > { %v1153_v45 = vpop.eup %1152  ;;  %v862_v51 = vxor.u32 2147483648, %v1151_v43  ;;  %v732_v52 = vshrl.u32 %v714_v58, %v730_v53  ;;  %v735_v63 = vadd.s32 127, %v734_v27 }
 0x1f2   : > { %v859_v26 = vxor.u32 2147483648, %v1153_v45  ;;  %v1155_v34 = vpop.eup %1154 }
 0x1f3   : > { %v863_v37 = vsel %vm861_vm0, %v862_v51, %v1153_v45  ;;  %v733_v4 = vor.u32 %v732_v52, %v731_v35  ;;  %v736_v5 = vshll.u32 %v735_v63, 23 }
 0x1f4   : > { %v860_v3 = vsel %vm858_vm1, %v1151_v43, %v859_v26 }
 0x1f5   : > { %v864_v61 = vsel %vm857_vm3, %v860_v3, %v863_v37  ;;  %v737_v8 = vor.u32 4788187, %v736_v5  ;;  %v740_v10 = vcvt.s32.f32 %v733_v4 }
 0x1f6   : > { %v865_v1 = vsel %vm854_vm2, nan, %v864_v61 }
 0x1f7   : > { %v869_v2 = vmul.f32 %v1155_v34, %v865_v1  ;;  %v738_v9 = vand.u32 2147483647, %v737_v8 }
 0x1f9   : > { %873 = vst [vmem:[%s1606_s10 + $0x18] sm:$0xff] %v869_v2  ;;  %v741_v12 = vmul.f32 %v740_v10, %v738_v9 }
 0x1fb   : > { %v742_v55 = vxor.u32 2147483648, %v741_v12 }
 0x1fd   : > { %v743_v38 = vsel %vm660_vm14, %v742_v55, %v741_v12 }
 0x1fe   : > { %v746_v13 = vsel %vm1645_vm13, %v1379_v47, %v743_v38 }
 0x1ff   : > { %1156 = vcosq.f32 %v746_v13 }
 0x200   : > { %1158 = vsinq.f32 %v746_v13 }
 0x201   : > { %1160 = vpow2.f32 %v446_v14 }
 0x209   : > { %v1157_v42 = vpop.eup %1156 }
 0x20a   : > { %v1159_v16 = vpop.eup %1158  ;;  %v758_v56 = vxor.u32 2147483648, %v1157_v42 }
 0x20b   : > { %v755_v58 = vxor.u32 2147483648, %v1159_v16  ;;  %v1161_v62 = vpop.eup %1160 }
 0x20c   : > { %v759_v60 = vsel %vm757_vm4, %v758_v56, %v1159_v16 }
 0x20d   : > { %v756_v17 = vsel %vm754_vm5, %v1157_v42, %v755_v58 }
 0x20e   : > { %v760_v41 = vsel %vm753_vm6, %v756_v17, %v759_v60 }
 0x20f   : > { %v761_v19 = vsel %vm750_vm7, nan, %v760_v41 }
 0x210   : > { %v868_v20 = vmul.f32 %v1161_v62, %v761_v19 }
 0x212   : > { %872 = vst [vmem:[%s1606_s10 + $0x10] sm:$0xff] %v868_v20 }
 0x213   : > { %1175 = shalt.err (!%p1172_p5)
}
 0x214   : > { %s1176_s30 = scalar_lea.hbm %s1671_s23, 512  ;;  %s1180_s6 = scalar_lea.hbm %s1727_s3, 1024 }
 0x215   : > { %p1177_p6 = scmp.ne.s32.totalorder %s1671_s23, %s1176_s30  ;;  %p1181_p10 = scmp.lt.u32.totalorder %s1671_s23, %s1727_s3 }
 0x216   : > { %p1182_p11 = scmp.lt.u32.totalorder %s1180_s6, %s1176_s30  ;;  %p1184_p13 = scmp.lt.u32.totalorder %s1176_s30, %s1671_s23 }
 0x217   : > { %p1178_p7 = pnand %p1177_p6, %p1311_p4 }
 0x218   : > { %p1183_p12 = por %p1182_p11, %p1181_p10 }
 0x219   : > { %p1179_p9 = pneg %p1178_p7 }
 0x21a   : > { %p1185_p0 = por %p1184_p13, %p1183_p12 }
 0x21c   : > { %p1186_p1 = pnand %p1185_p0, %p1179_p9 }
 0x21e   : > { %1189 = shalt.err (!%p1186_p1)
}
 0x21f   : > { %s1249_s9 = smov 128   ;;  %s1250_s10 = smov 8  }
 0x220   : > { %1075 = dma.vmem_to_hbm [thread:$0]  (%p1311_p4), %s1673_s18, 512, %s1671_s23, %s1678_s15, %s1249_s9, %s1249_s9, %s1250_s10  }
 0x221 PF: > { %p1081_p2 = scmp.ge.s32.totalorder %s1240_s17, 2  ;;  %s904_s11 = sand.u32 1, %s1220_s12  }
 0x222   : > { %s905_s19 = scalar_lea.sflag [#allocation3], %s904_s11 }
 0x223   : > { %p1078_p3 = pnand %p1081_p2, %p1318_p8 }
 0x225   : > { %1215 = dma.done.wait (!%p1078_p3), %s905_s19, 512  }
 0x226   : > { %1217 = vsyncadd (!%p1078_p3), %s905_s19, 4294966784  ;;  %s16_s17 = sadd.s32 1, %s1240_s17   ;;  %s1738_s12 = smov %s1224_s13 }
 0x227   : > { %p13_p5 = scmp.ge.s32.totalorder %s16_s17, 4   ;;  %s1739_s13 = smov %s1228_s14 }
 0x228   : > { %s1740_s14 = smov %s1324_s25  ;;  %s1741_s15 = smov %s1236_s16 }
 0x229   : > { %s1742_s16 = smov %s1744_s20  ;;  %15 = sbr.rel (!%p13_p5) target bundleno = 4 (0x4), region = 73 }
 0x230   :  { %910 = vsyncpa [#allocation3], 1 }
 0x231   :  { %912 = vsyncpa [#allocation3 + $0x1], 1 }

</bundles_post_ra>
